<compile_context>
chip_gen: v5e
topology: v5e:2x2
jax: 0.10.0
libtpu: 0.0.40
codegen_flags: <defaults>
</compile_context>

<pallas_src>
import functools

import jax
import jax.numpy as jnp
from jax.experimental import pallas as pl
from jax.experimental.pallas import tpu as pltpu


# ------------------------------ Pallas kernel ------------------------------ #

def temporal_block_kernel(x_ref, w1_ref, b1_ref, w2_ref, b2_ref, *rest,
                          dilation, kernel_size, b_tile, has_downsample):
    if has_downsample:
        wd_ref, bd_ref, o_ref, s1_ref, s2_ref = rest
    else:
        o_ref, s1_ref, s2_ref = rest

    K = kernel_size
    cin = x_ref.shape[1]
    cout = o_ref.shape[1]
    l_pad = o_ref.shape[-1]

    # Causal lane masks: hoisted once, shared by both convs and all samples.
    lane = jax.lax.broadcasted_iota(jnp.int32, (1, l_pad), 1)
    masks = {}
    for j in range(K):
        s = (K - 1 - j) * dilation
        if s > 0 and s not in masks:
            masks[s] = lane >= s

    def fill_stack(stack_ref, inp, c):
        """Write the (K*c, l_pad) tap-stacked operand into VMEM scratch."""
        zero = jnp.zeros((), inp.dtype)
        for j in range(K):
            s = (K - 1 - j) * dilation
            if s == 0:
                val = inp
            else:
                rolled = pltpu.roll(inp, s, axis=1)       # XLU lane rotate
                # Zero first s lanes: causal left pad + blocks roll wraparound.
                val = jnp.where(masks[s], rolled, zero)
            stack_ref[pl.ds(j * c, c), :] = val.astype(stack_ref.dtype)

    def body(b, carry):
        x_b = x_ref[b]                                    # (cin, l_pad)

        # conv1 -> chomp1 -> relu1   (dropout1 identity at inference)
        fill_stack(s1_ref, x_b, cin)
        h1 = jnp.maximum(
            jnp.dot(w1_ref[...], s1_ref[...],
                    preferred_element_type=jnp.float32) + b1_ref[...], 0.0)

        # conv2 -> chomp2 -> relu2   (dropout2 identity at inference)
        fill_stack(s2_ref, h1, cout)
        h2 = jnp.maximum(
            jnp.dot(w2_ref[...], s2_ref[...],
                    preferred_element_type=jnp.float32) + b2_ref[...], 0.0)

        # residual: 1x1 downsample conv only when Cin != Cout
        if has_downsample:
            res = jnp.dot(wd_ref[...], x_b,
                          preferred_element_type=jnp.float32) + bd_ref[...]
        else:
            res = x_b.astype(jnp.float32)

        o_ref[b] = jnp.maximum(h2 + res, 0.0).astype(o_ref.dtype)
        return carry

    jax.lax.fori_loop(0, b_tile, body, 0)


# --------------------------------- wrapper ---------------------------------- #

def _vmem_capacity_bytes():
    try:
        return int(pltpu.get_tpu_info().vmem_capacity_bytes)
    except Exception:
        return 64 << 20        # conservative (v7x per-TC VMEM)


def temporal_block(x, w1, b1, w2, b2, wd=None, bd=None, *, dilation,
                   compute_dtype=jnp.float32, out_dtype=jnp.float32):
    """Eval-mode TemporalBlock forward.

    x  : (N, Cin, L)                      torch NCW layout
    w1 : (Cout, Cin, K),  b1 : (Cout,)    conv1 (torch weight layout)
    w2 : (Cout, Cout, K), b2 : (Cout,)    conv2
    wd : (Cout, Cin), bd : (Cout,)        1x1 downsample (None iff Cin == Cout)
    """
    N, Cin, L = x.shape
    Cout, _, K = w1.shape
    has_downsample = wd is not None
    if not has_downsample:
        assert Cin == Cout, "identity residual requires Cin == Cout"

    c_item = jnp.dtype(compute_dtype).itemsize
    o_item = jnp.dtype(out_dtype).itemsize
    c_align = 16 if (c_item < 4 or o_item < 4) else 8     # bf16 sublane packing

    l_pad = pl.cdiv(L, 128) * 128                         # lane-dense samples
    cin_p = pl.cdiv(Cin, c_align) * c_align
    cout_p = pl.cdiv(Cout, c_align) * c_align

    # ---- VMEM-budget-driven samples-per-step (b_tile) ---------------------- #
    vmem_cap = _vmem_capacity_bytes()
    budget = int(0.45 * vmem_cap)
    weight_bytes = (cout_p * K * cin_p + cout_p * K * cout_p
                    + cout_p * cin_p) * c_item + 3 * cout_p * 4
    scratch_bytes = K * (cin_p + cout_p) * l_pad * c_item
    temp_bytes = 6 * cout_p * l_pad * 4                   # h1/h2/res temporaries
    fixed_bytes = 2 * weight_bytes + scratch_bytes + temp_bytes
    per_sample_bytes = 2 * (cin_p * c_item + cout_p * o_item) * l_pad  # dbl-buf I/O
    b_vmem = max(1, (budget - fixed_bytes) // per_sample_bytes)
    b_occ = max(1, N // 8)                                 # keep >=2 (ideally >=8) steps
    b_tile = int(max(1, min(N, b_vmem, b_occ)))

    n_pad = pl.cdiv(N, b_tile) * b_tile
    grid = (n_pad // b_tile,)

    needed = fixed_bytes + b_tile * per_sample_bytes
    vmem_limit = int(min(int(0.9 * vmem_cap), max(2 * needed, 32 << 20)))

    # ---- host-side prep: pad only (no transposes) --------------------------- #
    x_p = jnp.pad(x, ((0, n_pad - N), (0, cin_p - Cin),
                      (0, l_pad - L))).astype(compute_dtype)

    # Tap-fused weight stacks: (Cout_p, K*Cin_p), column block j = tap j.
    w1p = jnp.pad(w1, ((0, cout_p - Cout), (0, cin_p - Cin), (0, 0)))
    w2p = jnp.pad(w2, ((0, cout_p - Cout), (0, cout_p - Cout), (0, 0)))
    w1s = jnp.transpose(w1p, (0, 2, 1)).reshape(cout_p, K * cin_p).astype(compute_dtype)
    w2s = jnp.transpose(w2p, (0, 2, 1)).reshape(cout_p, K * cout_p).astype(compute_dtype)
    b1c = jnp.pad(b1, (0, cout_p - Cout)).astype(jnp.float32)[:, None]
    b2c = jnp.pad(b2, (0, cout_p - Cout)).astype(jnp.float32)[:, None]
    if has_downsample:
        wdp = jnp.pad(wd, ((0, cout_p - Cout), (0, cin_p - Cin))).astype(compute_dtype)
        bdc = jnp.pad(bd, (0, cout_p - Cout)).astype(jnp.float32)[:, None]

    kern = functools.partial(
        temporal_block_kernel, dilation=dilation, kernel_size=K,
        b_tile=b_tile, has_downsample=has_downsample)

    def const_spec(shape, single_buffer):
        # Weights/biases never change across grid steps; keep a single VMEM copy.
        if single_buffer:
            return pl.BlockSpec(shape, lambda i: (0,) * len(shape),
                                pipeline_mode=pl.Buffered(1))
        return pl.BlockSpec(shape, lambda i: (0,) * len(shape))

    def run(single_buffer_weights):
        in_specs = [
            pl.BlockSpec((b_tile, cin_p, l_pad), lambda i: (i, 0, 0)),   # x tile (NCW)
            const_spec((cout_p, K * cin_p), single_buffer_weights),      # w1 stacked
            const_spec((cout_p, 1), single_buffer_weights),              # b1
            const_spec((cout_p, K * cout_p), single_buffer_weights),     # w2 stacked
            const_spec((cout_p, 1), single_buffer_weights),              # b2
        ]
        args = [x_p, w1s, b1c, w2s, b2c]
        if has_downsample:
            in_specs += [const_spec((cout_p, cin_p), single_buffer_weights),
                         const_spec((cout_p, 1), single_buffer_weights)]
            args += [wdp, bdc]

        call = pl.pallas_call(
            kern,
            out_shape=jax.ShapeDtypeStruct((n_pad, cout_p, l_pad), out_dtype),
            grid=grid,
            in_specs=in_specs,
            out_specs=pl.BlockSpec((b_tile, cout_p, l_pad), lambda i: (i, 0, 0)),
            scratch_shapes=[pltpu.VMEM((K * cin_p, l_pad), compute_dtype),
                            pltpu.VMEM((K * cout_p, l_pad), compute_dtype)],
            compiler_params=pltpu.CompilerParams(
                dimension_semantics=("parallel",),
                vmem_limit_bytes=vmem_limit),
        )
        return jax.block_until_ready(call(*args))

    try:
        out3d = run(True)
    except Exception:
        # Older JAX without pipeline_mode / Buffered(1): fall back to defaults.
        out3d = run(False)

    # Output is already NCW; only strip padding.
    return out3d[:N, :Cout, :L]


# ----------------------------- pure-JAX reference --------------------------- #

def ref_temporal_block(x, w1_t, b1, w2_t, b2, wd, bd, dilation):
    """Weights in torch layout (Cout, Cin, K). Mirrors TemporalBlock.forward (eval)."""
    def conv(inp, w, b):
        Cout, _, K = w.shape
        N, _, L = inp.shape
        p = (K - 1) * dilation
        xp = jnp.pad(inp, ((0, 0), (0, 0), (p, 0)))
        out = jnp.zeros((N, Cout, L), jnp.float32)
        for j in range(K):
            seg = xp[:, :, j * dilation: j * dilation + L]
            out = out + jnp.einsum('oc,ncl->nol', w[:, :, j], seg)
        return out + b[None, :, None]

    h1 = jax.nn.relu(conv(x, w1_t, b1))
    h2 = jax.nn.relu(conv(h1, w2_t, b2))
    if wd is None:
        res = x
    else:
        res = jnp.einsum('oc,ncl->nol', wd, x) + bd[None, :, None]
    return jax.nn.relu(h2 + res)


# ----------------------------------- main ------------------------------------ #

if __name__ == "__main__":
    # TemporalBlock(in_channels=4, out_channels=8, kernel_size=3,
    #               stride=1, dilation=2, dropout=0.1)
    N, Cin, Cout, K, L = 2, 4, 8, 3, 16
    dilation = 2

    key = jax.random.PRNGKey(0)
    k_x, k_w1, k_b1, k_w2, k_b2, k_wd, k_bd = jax.random.split(key, 7)

    x = jax.random.normal(k_x, (N, Cin, L), jnp.float32)
    w1 = 0.3 * jax.random.normal(k_w1, (Cout, Cin, K), jnp.float32)   # conv1.weight
    b1 = 0.1 * jax.random.normal(k_b1, (Cout,), jnp.float32)          # conv1.bias
    w2 = 0.3 * jax.random.normal(k_w2, (Cout, Cout, K), jnp.float32)  # conv2.weight
    b2 = 0.1 * jax.random.normal(k_b2, (Cout,), jnp.float32)          # conv2.bias
    wd = 0.3 * jax.random.normal(k_wd, (Cout, Cin), jnp.float32)      # downsample.weight
    bd = 0.1 * jax.random.normal(k_bd, (Cout,), jnp.float32)          # downsample.bias

    # f32 path (exact check), downsample residual.
    out = temporal_block(x, w1, b1, w2, b2, wd, bd, dilation=dilation)
    out = jax.block_until_ready(out)
    ref = ref_temporal_block(x, w1, b1, w2, b2, wd, bd, dilation)
    assert out.shape == (N, Cout, L)
    assert jnp.allclose(out, ref, atol=1e-4, rtol=1e-4), \
        f"max abs err {jnp.max(jnp.abs(out - ref)):.3e}"

    # Identity-residual path (Cin == Cout -> downsample is None in PyTorch).
    key2 = jax.random.PRNGKey(1)
    k_x2, k_w1b, k_w2b = jax.random.split(key2, 3)
    x2 = jax.random.normal(k_x2, (N, Cout, L), jnp.float32)
    w1b = 0.3 * jax.random.normal(k_w1b, (Cout, Cout, K), jnp.float32)
    w2b = 0.3 * jax.random.normal(k_w2b, (Cout, Cout, K), jnp.float32)
    out2 = temporal_block(x2, w1b, b1, w2b, b2, dilation=dilation)
    out2 = jax.block_until_ready(out2)
    ref2 = ref_temporal_block(x2, w1b, b1, w2b, b2, None, None, dilation)
    assert jnp.allclose(out2, ref2, atol=1e-4, rtol=1e-4), \
        f"max abs err {jnp.max(jnp.abs(out2 - ref2)):.3e}"

    # bf16 compute/storage path (v6e/v7x perf config): loose tolerance expected.
    out_bf = temporal_block(x, w1, b1, w2, b2, wd, bd, dilation=dilation,
                            compute_dtype=jnp.bfloat16)
    out_bf = jax.block_until_ready(out_bf)
    assert jnp.allclose(out_bf, ref, atol=1e-1, rtol=1e-1), \
        f"bf16 max abs err {jnp.max(jnp.abs(out_bf - ref)):.3e}"

    print("KERNEL_OK")
</pallas_src>

<mosaic_0001>
module attributes {stable_mosaic.version = 11 : i64} {
  func.func @temporal_block_kernel(%arg0: i32, %arg1: memref<1x8x128xf32, #tpu.memory_space<vmem>>, %arg2: memref<8x24xf32, #tpu.memory_space<vmem>>, %arg3: memref<8x1xf32, #tpu.memory_space<vmem>>, %arg4: memref<8x24xf32, #tpu.memory_space<vmem>>, %arg5: memref<8x1xf32, #tpu.memory_space<vmem>>, %arg6: memref<8x8xf32, #tpu.memory_space<vmem>>, %arg7: memref<8x1xf32, #tpu.memory_space<vmem>>, %arg8: memref<1x8x128xf32, #tpu.memory_space<vmem>>, %arg9: memref<24x128xf32, #tpu.memory_space<vmem>>, %arg10: memref<24x128xf32, #tpu.memory_space<vmem>>) attributes {dimension_semantics = [#tpu.dimension_semantics<parallel>], iteration_bounds = array<i64: 2>, scalar_prefetch = 0 : i64, scratch_operands = 2 : i64, tpu.core_type = #tpu.core_type<tc>, window_params = [{transform_indices = @transform_0, window_bounds = array<i64: 1, 8, 128>}, {pipeline_mode = #tpu.pipeline_mode<synchronous>, transform_indices = @transform_1, window_bounds = array<i64: 8, 24>}, {pipeline_mode = #tpu.pipeline_mode<synchronous>, transform_indices = @transform_2, window_bounds = array<i64: 8, 1>}, {pipeline_mode = #tpu.pipeline_mode<synchronous>, transform_indices = @transform_3, window_bounds = array<i64: 8, 24>}, {pipeline_mode = #tpu.pipeline_mode<synchronous>, transform_indices = @transform_4, window_bounds = array<i64: 8, 1>}, {pipeline_mode = #tpu.pipeline_mode<synchronous>, transform_indices = @transform_5, window_bounds = array<i64: 8, 8>}, {pipeline_mode = #tpu.pipeline_mode<synchronous>, transform_indices = @transform_6, window_bounds = array<i64: 8, 1>}, {transform_indices = @transform_7, window_bounds = array<i64: 1, 8, 128>}]} {
    %0 = tpu.iota {dimensions = array<i32: 1>} : vector<1x128xi32>
    %c4_i32 = arith.constant 4 : i32
    %1 = vector.broadcast %c4_i32 : i32 to vector<1x128xi32>
    %2 = arith.cmpi sge, %0, %1 : vector<1x128xi32>
    %c2_i32 = arith.constant 2 : i32
    %3 = vector.broadcast %c2_i32 : i32 to vector<1x128xi32>
    %4 = arith.cmpi sge, %0, %3 : vector<1x128xi32>
    %c0_i32 = arith.constant 0 : i32
    %5 = arith.index_cast %c0_i32 : i32 to index
    %c0 = arith.constant 0 : index
    %c0_0 = arith.constant 0 : index
    %6 = vector.load %arg1[%5, %c0, %c0_0] : memref<1x8x128xf32, #tpu.memory_space<vmem>>, vector<1x8x128xf32>
    %7 = vector.shape_cast %6 : vector<1x8x128xf32> to vector<8x128xf32>
    %c4_i32_1 = arith.constant 4 : i32
    %8 = tpu.dynamic_rotate %7 by %c4_i32_1 dim 1 : vector<8x128xf32>, i32 -> vector<8x128xf32>
    %cst = arith.constant 0.000000e+00 : f32
    %9 = vector.shape_cast %2 : vector<1x128xi1> to vector<1x128xi1>
    %10 = vector.broadcast %9 : vector<1x128xi1> to vector<8x128xi1>
    %11 = vector.broadcast %cst : f32 to vector<8x128xf32>
    %12 = arith.select %10, %8, %11 : vector<8x128xi1>, vector<8x128xf32>
    %c0_2 = arith.constant 0 : index
    %c0_3 = arith.constant 0 : index
    %13 = vector.load %arg9[%c0_2, %c0_3] : memref<24x128xf32, #tpu.memory_space<vmem>>, vector<8x128xf32>
    tpu.vector_store %arg9[%c0_2, %c0_3], %12 {strides = array<i32>} : memref<24x128xf32, #tpu.memory_space<vmem>>, vector<8x128xf32>,
    %c2_i32_4 = arith.constant 2 : i32
    %14 = tpu.dynamic_rotate %7 by %c2_i32_4 dim 1 : vector<8x128xf32>, i32 -> vector<8x128xf32>
    %cst_5 = arith.constant 0.000000e+00 : f32
    %15 = vector.shape_cast %4 : vector<1x128xi1> to vector<1x128xi1>
    %16 = vector.broadcast %15 : vector<1x128xi1> to vector<8x128xi1>
    %17 = vector.broadcast %cst_5 : f32 to vector<8x128xf32>
    %18 = arith.select %16, %14, %17 : vector<8x128xi1>, vector<8x128xf32>
    %c8 = arith.constant 8 : index
    %c0_6 = arith.constant 0 : index
    %19 = vector.load %arg9[%c8, %c0_6] : memref<24x128xf32, #tpu.memory_space<vmem>>, vector<8x128xf32>
    tpu.vector_store %arg9[%c8, %c0_6], %18 {strides = array<i32>} : memref<24x128xf32, #tpu.memory_space<vmem>>, vector<8x128xf32>,
    %c16 = arith.constant 16 : index
    %c0_7 = arith.constant 0 : index
    %20 = vector.load %arg9[%c16, %c0_7] : memref<24x128xf32, #tpu.memory_space<vmem>>, vector<8x128xf32>
    tpu.vector_store %arg9[%c16, %c0_7], %7 {strides = array<i32>} : memref<24x128xf32, #tpu.memory_space<vmem>>, vector<8x128xf32>,
    %c0_8 = arith.constant 0 : index
    %c0_9 = arith.constant 0 : index
    %21 = vector.load %arg2[%c0_8, %c0_9] : memref<8x24xf32, #tpu.memory_space<vmem>>, vector<8x24xf32>
    %c0_10 = arith.constant 0 : index
    %c0_11 = arith.constant 0 : index
    %22 = vector.load %arg9[%c0_10, %c0_11] : memref<24x128xf32, #tpu.memory_space<vmem>>, vector<24x128xf32>
    %cst_12 = arith.constant dense<0.000000e+00> : vector<8x128xf32>
    %23 = tpu.matmul %21, %22, %cst_12 {dimension_numbers = #tpu.dot_dimension_numbers<[1], [0], [0], [1], [0, 0, 1, 1], [], []>} : vector<8x24xf32>, vector<24x128xf32>, vector<8x128xf32> -> vector<8x128xf32>
    %c0_13 = arith.constant 0 : index
    %c0_14 = arith.constant 0 : index
    %24 = vector.load %arg3[%c0_13, %c0_14] : memref<8x1xf32, #tpu.memory_space<vmem>>, vector<8x1xf32>
    %25 = vector.broadcast %24 : vector<8x1xf32> to vector<8x128xf32>
    %26 = arith.addf %23, %25 : vector<8x128xf32>
    %cst_15 = arith.constant 0.000000e+00 : f32
    %27 = vector.broadcast %cst_15 : f32 to vector<8x128xf32>
    %28 = arith.maximumf %26, %27 : vector<8x128xf32>
    %c4_i32_16 = arith.constant 4 : i32
    %29 = tpu.dynamic_rotate %28 by %c4_i32_16 dim 1 : vector<8x128xf32>, i32 -> vector<8x128xf32>
    %cst_17 = arith.constant 0.000000e+00 : f32
    %30 = vector.shape_cast %2 : vector<1x128xi1> to vector<1x128xi1>
    %31 = vector.broadcast %30 : vector<1x128xi1> to vector<8x128xi1>
    %32 = vector.broadcast %cst_17 : f32 to vector<8x128xf32>
    %33 = arith.select %31, %29, %32 : vector<8x128xi1>, vector<8x128xf32>
    %c0_18 = arith.constant 0 : index
    %c0_19 = arith.constant 0 : index
    %34 = vector.load %arg10[%c0_18, %c0_19] : memref<24x128xf32, #tpu.memory_space<vmem>>, vector<8x128xf32>
    tpu.vector_store %arg10[%c0_18, %c0_19], %33 {strides = array<i32>} : memref<24x128xf32, #tpu.memory_space<vmem>>, vector<8x128xf32>,
    %c2_i32_20 = arith.constant 2 : i32
    %35 = tpu.dynamic_rotate %28 by %c2_i32_20 dim 1 : vector<8x128xf32>, i32 -> vector<8x128xf32>
    %cst_21 = arith.constant 0.000000e+00 : f32
    %36 = vector.shape_cast %4 : vector<1x128xi1> to vector<1x128xi1>
    %37 = vector.broadcast %36 : vector<1x128xi1> to vector<8x128xi1>
    %38 = vector.broadcast %cst_21 : f32 to vector<8x128xf32>
    %39 = arith.select %37, %35, %38 : vector<8x128xi1>, vector<8x128xf32>
    %c8_22 = arith.constant 8 : index
    %c0_23 = arith.constant 0 : index
    %40 = vector.load %arg10[%c8_22, %c0_23] : memref<24x128xf32, #tpu.memory_space<vmem>>, vector<8x128xf32>
    tpu.vector_store %arg10[%c8_22, %c0_23], %39 {strides = array<i32>} : memref<24x128xf32, #tpu.memory_space<vmem>>, vector<8x128xf32>,
    %c16_24 = arith.constant 16 : index
    %c0_25 = arith.constant 0 : index
    %41 = vector.load %arg10[%c16_24, %c0_25] : memref<24x128xf32, #tpu.memory_space<vmem>>, vector<8x128xf32>
    tpu.vector_store %arg10[%c16_24, %c0_25], %28 {strides = array<i32>} : memref<24x128xf32, #tpu.memory_space<vmem>>, vector<8x128xf32>,
    %c0_26 = arith.constant 0 : index
    %c0_27 = arith.constant 0 : index
    %42 = vector.load %arg4[%c0_26, %c0_27] : memref<8x24xf32, #tpu.memory_space<vmem>>, vector<8x24xf32>
    %c0_28 = arith.constant 0 : index
    %c0_29 = arith.constant 0 : index
    %43 = vector.load %arg10[%c0_28, %c0_29] : memref<24x128xf32, #tpu.memory_space<vmem>>, vector<24x128xf32>
    %cst_30 = arith.constant dense<0.000000e+00> : vector<8x128xf32>
    %44 = tpu.matmul %42, %43, %cst_30 {dimension_numbers = #tpu.dot_dimension_numbers<[1], [0], [0], [1], [0, 0, 1, 1], [], []>} : vector<8x24xf32>, vector<24x128xf32>, vector<8x128xf32> -> vector<8x128xf32>
    %c0_31 = arith.constant 0 : index
    %c0_32 = arith.constant 0 : index
    %45 = vector.load %arg5[%c0_31, %c0_32] : memref<8x1xf32, #tpu.memory_space<vmem>>, vector<8x1xf32>
    %46 = vector.broadcast %45 : vector<8x1xf32> to vector<8x128xf32>
    %47 = arith.addf %44, %46 : vector<8x128xf32>
    %cst_33 = arith.constant 0.000000e+00 : f32
    %48 = vector.broadcast %cst_33 : f32 to vector<8x128xf32>
    %49 = arith.maximumf %47, %48 : vector<8x128xf32>
    %c0_34 = arith.constant 0 : index
    %c0_35 = arith.constant 0 : index
    %50 = vector.load %arg6[%c0_34, %c0_35] : memref<8x8xf32, #tpu.memory_space<vmem>>, vector<8x8xf32>
    %cst_36 = arith.constant dense<0.000000e+00> : vector<8x128xf32>
    %51 = tpu.matmul %50, %7, %cst_36 {dimension_numbers = #tpu.dot_dimension_numbers<[1], [0], [0], [1], [0, 0, 1, 1], [], []>} : vector<8x8xf32>, vector<8x128xf32>, vector<8x128xf32> -> vector<8x128xf32>
    %c0_37 = arith.constant 0 : index
    %c0_38 = arith.constant 0 : index
    %52 = vector.load %arg7[%c0_37, %c0_38] : memref<8x1xf32, #tpu.memory_space<vmem>>, vector<8x1xf32>
    %53 = vector.broadcast %52 : vector<8x1xf32> to vector<8x128xf32>
    %54 = arith.addf %51, %53 : vector<8x128xf32>
    %55 = arith.addf %49, %54 : vector<8x128xf32>
    %cst_39 = arith.constant 0.000000e+00 : f32
    %56 = vector.broadcast %cst_39 : f32 to vector<8x128xf32>
    %57 = arith.maximumf %55, %56 : vector<8x128xf32>
    %58 = arith.index_cast %c0_i32 : i32 to index
    %c0_40 = arith.constant 0 : index
    %c0_41 = arith.constant 0 : index
    %59 = vector.load %arg8[%58, %c0_40, %c0_41] : memref<1x8x128xf32, #tpu.memory_space<vmem>>, vector<1x8x128xf32>
    %60 = vector.shape_cast %59 : vector<1x8x128xf32> to vector<8x128xf32>
    %61 = vector.shape_cast %57 : vector<8x128xf32> to vector<1x8x128xf32>
    tpu.vector_store %arg8[%58, %c0_40, %c0_41], %61 {strides = array<i32>} : memref<1x8x128xf32, #tpu.memory_space<vmem>>, vector<1x8x128xf32>,
    %c1_i32 = arith.constant 1 : i32
    return
  }
  func.func @transform_0(%arg0: i32) -> (i32, i32, i32) {
    %c0_i32 = arith.constant 0 : i32
    %c0_i32_0 = arith.constant 0 : i32
    %c0_i32_1 = arith.constant 0 : i32
    return %arg0, %c0_i32, %c0_i32_0 : i32, i32, i32
  }
  func.func @transform_1(%arg0: i32) -> (i32, i32) {
    %c0_i32 = arith.constant 0 : i32
    %c0_i32_0 = arith.constant 0 : i32
    %c0_i32_1 = arith.constant 0 : i32
    return %c0_i32, %c0_i32_0 : i32, i32
  }
  func.func @transform_2(%arg0: i32) -> (i32, i32) {
    %c0_i32 = arith.constant 0 : i32
    %c0_i32_0 = arith.constant 0 : i32
    %c0_i32_1 = arith.constant 0 : i32
    return %c0_i32, %c0_i32_0 : i32, i32
  }
  func.func @transform_3(%arg0: i32) -> (i32, i32) {
    %c0_i32 = arith.constant 0 : i32
    %c0_i32_0 = arith.constant 0 : i32
    %c0_i32_1 = arith.constant 0 : i32
    return %c0_i32, %c0_i32_0 : i32, i32
  }
  func.func @transform_4(%arg0: i32) -> (i32, i32) {
    %c0_i32 = arith.constant 0 : i32
    %c0_i32_0 = arith.constant 0 : i32
    %c0_i32_1 = arith.constant 0 : i32
    return %c0_i32, %c0_i32_0 : i32, i32
  }
  func.func @transform_5(%arg0: i32) -> (i32, i32) {
    %c0_i32 = arith.constant 0 : i32
    %c0_i32_0 = arith.constant 0 : i32
    %c0_i32_1 = arith.constant 0 : i32
    return %c0_i32, %c0_i32_0 : i32, i32
  }
  func.func @transform_6(%arg0: i32) -> (i32, i32) {
    %c0_i32 = arith.constant 0 : i32
    %c0_i32_0 = arith.constant 0 : i32
    %c0_i32_1 = arith.constant 0 : i32
    return %c0_i32, %c0_i32_0 : i32, i32
  }
  func.func @transform_7(%arg0: i32) -> (i32, i32, i32) {
    %c0_i32 = arith.constant 0 : i32
    %c0_i32_0 = arith.constant 0 : i32
    %c0_i32_1 = arith.constant 0 : i32
    return %arg0, %c0_i32, %c0_i32_0 : i32, i32, i32
  }
}

module attributes {stable_mosaic.version = 11 : i64} {
  func.func @temporal_block_kernel(%arg0: i32, %arg1: memref<1x8x128xf32, #tpu.memory_space<vmem>>, %arg2: memref<8x24xf32, #tpu.memory_space<vmem>>, %arg3: memref<8x1xf32, #tpu.memory_space<vmem>>, %arg4: memref<8x24xf32, #tpu.memory_space<vmem>>, %arg5: memref<8x1xf32, #tpu.memory_space<vmem>>, %arg6: memref<8x8xf32, #tpu.memory_space<vmem>>, %arg7: memref<8x1xf32, #tpu.memory_space<vmem>>, %arg8: memref<1x8x128xf32, #tpu.memory_space<vmem>>, %arg9: memref<24x128xf32, #tpu.memory_space<vmem>>, %arg10: memref<24x128xf32, #tpu.memory_space<vmem>>) attributes {dimension_semantics = [#tpu.dimension_semantics<parallel>], iteration_bounds = array<i64: 2>, scalar_prefetch = 0 : i64, scratch_operands = 2 : i64, tpu.core_type = #tpu.core_type<tc>, window_params = [{transform_indices = @transform_0, window_bounds = array<i64: 1, 8, 128>}, {pipeline_mode = #tpu.pipeline_mode<synchronous>, transform_indices = @transform_1, window_bounds = array<i64: 8, 24>}, {pipeline_mode = #tpu.pipeline_mode<synchronous>, transform_indices = @transform_2, window_bounds = array<i64: 8, 1>}, {pipeline_mode = #tpu.pipeline_mode<synchronous>, transform_indices = @transform_3, window_bounds = array<i64: 8, 24>}, {pipeline_mode = #tpu.pipeline_mode<synchronous>, transform_indices = @transform_4, window_bounds = array<i64: 8, 1>}, {pipeline_mode = #tpu.pipeline_mode<synchronous>, transform_indices = @transform_5, window_bounds = array<i64: 8, 8>}, {pipeline_mode = #tpu.pipeline_mode<synchronous>, transform_indices = @transform_6, window_bounds = array<i64: 8, 1>}, {transform_indices = @transform_7, window_bounds = array<i64: 1, 8, 128>}]} {
    %0 = tpu.iota {dimensions = array<i32: 1>} : vector<1x128xi32>
    %c4_i32 = arith.constant 4 : i32
    %1 = vector.broadcast %c4_i32 : i32 to vector<1x128xi32>
    %2 = arith.cmpi sge, %0, %1 : vector<1x128xi32>
    %c2_i32 = arith.constant 2 : i32
    %3 = vector.broadcast %c2_i32 : i32 to vector<1x128xi32>
    %4 = arith.cmpi sge, %0, %3 : vector<1x128xi32>
    %c0_i32 = arith.constant 0 : i32
    %5 = arith.index_cast %c0_i32 : i32 to index
    %c0 = arith.constant 0 : index
    %c0_0 = arith.constant 0 : index
    %6 = vector.load %arg1[%5, %c0, %c0_0] : memref<1x8x128xf32, #tpu.memory_space<vmem>>, vector<1x8x128xf32>
    %7 = vector.shape_cast %6 : vector<1x8x128xf32> to vector<8x128xf32>
    %c4_i32_1 = arith.constant 4 : i32
    %8 = tpu.dynamic_rotate %7 by %c4_i32_1 dim 1 : vector<8x128xf32>, i32 -> vector<8x128xf32>
    %cst = arith.constant 0.000000e+00 : f32
    %9 = vector.shape_cast %2 : vector<1x128xi1> to vector<1x128xi1>
    %10 = vector.broadcast %9 : vector<1x128xi1> to vector<8x128xi1>
    %11 = vector.broadcast %cst : f32 to vector<8x128xf32>
    %12 = arith.select %10, %8, %11 : vector<8x128xi1>, vector<8x128xf32>
    %c0_2 = arith.constant 0 : index
    %c0_3 = arith.constant 0 : index
    %13 = vector.load %arg9[%c0_2, %c0_3] : memref<24x128xf32, #tpu.memory_space<vmem>>, vector<8x128xf32>
    tpu.vector_store %arg9[%c0_2, %c0_3], %12 {strides = array<i32>} : memref<24x128xf32, #tpu.memory_space<vmem>>, vector<8x128xf32>,
    %c2_i32_4 = arith.constant 2 : i32
    %14 = tpu.dynamic_rotate %7 by %c2_i32_4 dim 1 : vector<8x128xf32>, i32 -> vector<8x128xf32>
    %cst_5 = arith.constant 0.000000e+00 : f32
    %15 = vector.shape_cast %4 : vector<1x128xi1> to vector<1x128xi1>
    %16 = vector.broadcast %15 : vector<1x128xi1> to vector<8x128xi1>
    %17 = vector.broadcast %cst_5 : f32 to vector<8x128xf32>
    %18 = arith.select %16, %14, %17 : vector<8x128xi1>, vector<8x128xf32>
    %c8 = arith.constant 8 : index
    %c0_6 = arith.constant 0 : index
    %19 = vector.load %arg9[%c8, %c0_6] : memref<24x128xf32, #tpu.memory_space<vmem>>, vector<8x128xf32>
    tpu.vector_store %arg9[%c8, %c0_6], %18 {strides = array<i32>} : memref<24x128xf32, #tpu.memory_space<vmem>>, vector<8x128xf32>,
    %c16 = arith.constant 16 : index
    %c0_7 = arith.constant 0 : index
    %20 = vector.load %arg9[%c16, %c0_7] : memref<24x128xf32, #tpu.memory_space<vmem>>, vector<8x128xf32>
    tpu.vector_store %arg9[%c16, %c0_7], %7 {strides = array<i32>} : memref<24x128xf32, #tpu.memory_space<vmem>>, vector<8x128xf32>,
    %c0_8 = arith.constant 0 : index
    %c0_9 = arith.constant 0 : index
    %21 = vector.load %arg2[%c0_8, %c0_9] : memref<8x24xf32, #tpu.memory_space<vmem>>, vector<8x24xf32>
    %c0_10 = arith.constant 0 : index
    %c0_11 = arith.constant 0 : index
    %22 = vector.load %arg9[%c0_10, %c0_11] : memref<24x128xf32, #tpu.memory_space<vmem>>, vector<24x128xf32>
    %cst_12 = arith.constant dense<0.000000e+00> : vector<8x128xf32>
    %23 = tpu.matmul %21, %22, %cst_12 {dimension_numbers = #tpu.dot_dimension_numbers<[1], [0], [0], [1], [0, 0, 1, 1], [], []>} : vector<8x24xf32>, vector<24x128xf32>, vector<8x128xf32> -> vector<8x128xf32>
    %c0_13 = arith.constant 0 : index
    %c0_14 = arith.constant 0 : index
    %24 = vector.load %arg3[%c0_13, %c0_14] : memref<8x1xf32, #tpu.memory_space<vmem>>, vector<8x1xf32>
    %25 = vector.broadcast %24 : vector<8x1xf32> to vector<8x128xf32>
    %26 = arith.addf %23, %25 : vector<8x128xf32>
    %cst_15 = arith.constant 0.000000e+00 : f32
    %27 = vector.broadcast %cst_15 : f32 to vector<8x128xf32>
    %28 = arith.maximumf %26, %27 : vector<8x128xf32>
    %c4_i32_16 = arith.constant 4 : i32
    %29 = tpu.dynamic_rotate %28 by %c4_i32_16 dim 1 : vector<8x128xf32>, i32 -> vector<8x128xf32>
    %cst_17 = arith.constant 0.000000e+00 : f32
    %30 = vector.shape_cast %2 : vector<1x128xi1> to vector<1x128xi1>
    %31 = vector.broadcast %30 : vector<1x128xi1> to vector<8x128xi1>
    %32 = vector.broadcast %cst_17 : f32 to vector<8x128xf32>
    %33 = arith.select %31, %29, %32 : vector<8x128xi1>, vector<8x128xf32>
    %c0_18 = arith.constant 0 : index
    %c0_19 = arith.constant 0 : index
    %34 = vector.load %arg10[%c0_18, %c0_19] : memref<24x128xf32, #tpu.memory_space<vmem>>, vector<8x128xf32>
    tpu.vector_store %arg10[%c0_18, %c0_19], %33 {strides = array<i32>} : memref<24x128xf32, #tpu.memory_space<vmem>>, vector<8x128xf32>,
    %c2_i32_20 = arith.constant 2 : i32
    %35 = tpu.dynamic_rotate %28 by %c2_i32_20 dim 1 : vector<8x128xf32>, i32 -> vector<8x128xf32>
    %cst_21 = arith.constant 0.000000e+00 : f32
    %36 = vector.shape_cast %4 : vector<1x128xi1> to vector<1x128xi1>
    %37 = vector.broadcast %36 : vector<1x128xi1> to vector<8x128xi1>
    %38 = vector.broadcast %cst_21 : f32 to vector<8x128xf32>
    %39 = arith.select %37, %35, %38 : vector<8x128xi1>, vector<8x128xf32>
    %c8_22 = arith.constant 8 : index
    %c0_23 = arith.constant 0 : index
    %40 = vector.load %arg10[%c8_22, %c0_23] : memref<24x128xf32, #tpu.memory_space<vmem>>, vector<8x128xf32>
    tpu.vector_store %arg10[%c8_22, %c0_23], %39 {strides = array<i32>} : memref<24x128xf32, #tpu.memory_space<vmem>>, vector<8x128xf32>,
    %c16_24 = arith.constant 16 : index
    %c0_25 = arith.constant 0 : index
    %41 = vector.load %arg10[%c16_24, %c0_25] : memref<24x128xf32, #tpu.memory_space<vmem>>, vector<8x128xf32>
    tpu.vector_store %arg10[%c16_24, %c0_25], %28 {strides = array<i32>} : memref<24x128xf32, #tpu.memory_space<vmem>>, vector<8x128xf32>,
    %c0_26 = arith.constant 0 : index
    %c0_27 = arith.constant 0 : index
    %42 = vector.load %arg4[%c0_26, %c0_27] : memref<8x24xf32, #tpu.memory_space<vmem>>, vector<8x24xf32>
    %c0_28 = arith.constant 0 : index
    %c0_29 = arith.constant 0 : index
    %43 = vector.load %arg10[%c0_28, %c0_29] : memref<24x128xf32, #tpu.memory_space<vmem>>, vector<24x128xf32>
    %cst_30 = arith.constant dense<0.000000e+00> : vector<8x128xf32>
    %44 = tpu.matmul %42, %43, %cst_30 {dimension_numbers = #tpu.dot_dimension_numbers<[1], [0], [0], [1], [0, 0, 1, 1], [], []>} : vector<8x24xf32>, vector<24x128xf32>, vector<8x128xf32> -> vector<8x128xf32>
    %c0_31 = arith.constant 0 : index
    %c0_32 = arith.constant 0 : index
    %45 = vector.load %arg5[%c0_31, %c0_32] : memref<8x1xf32, #tpu.memory_space<vmem>>, vector<8x1xf32>
    %46 = vector.broadcast %45 : vector<8x1xf32> to vector<8x128xf32>
    %47 = arith.addf %44, %46 : vector<8x128xf32>
    %cst_33 = arith.constant 0.000000e+00 : f32
    %48 = vector.broadcast %cst_33 : f32 to vector<8x128xf32>
    %49 = arith.maximumf %47, %48 : vector<8x128xf32>
    %c0_34 = arith.constant 0 : index
    %c0_35 = arith.constant 0 : index
    %50 = vector.load %arg6[%c0_34, %c0_35] : memref<8x8xf32, #tpu.memory_space<vmem>>, vector<8x8xf32>
    %cst_36 = arith.constant dense<0.000000e+00> : vector<8x128xf32>
    %51 = tpu.matmul %50, %7, %cst_36 {dimension_numbers = #tpu.dot_dimension_numbers<[1], [0], [0], [1], [0, 0, 1, 1], [], []>} : vector<8x8xf32>, vector<8x128xf32>, vector<8x128xf32> -> vector<8x128xf32>
    %c0_37 = arith.constant 0 : index
    %c0_38 = arith.constant 0 : index
    %52 = vector.load %arg7[%c0_37, %c0_38] : memref<8x1xf32, #tpu.memory_space<vmem>>, vector<8x1xf32>
    %53 = vector.broadcast %52 : vector<8x1xf32> to vector<8x128xf32>
    %54 = arith.addf %51, %53 : vector<8x128xf32>
    %55 = arith.addf %49, %54 : vector<8x128xf32>
    %cst_39 = arith.constant 0.000000e+00 : f32
    %56 = vector.broadcast %cst_39 : f32 to vector<8x128xf32>
    %57 = arith.maximumf %55, %56 : vector<8x128xf32>
    %58 = arith.index_cast %c0_i32 : i32 to index
    %c0_40 = arith.constant 0 : index
    %c0_41 = arith.constant 0 : index
    %59 = vector.load %arg8[%58, %c0_40, %c0_41] : memref<1x8x128xf32, #tpu.memory_space<vmem>>, vector<1x8x128xf32>
    %60 = vector.shape_cast %59 : vector<1x8x128xf32> to vector<8x128xf32>
    %61 = vector.shape_cast %57 : vector<8x128xf32> to vector<1x8x128xf32>
    tpu.vector_store %arg8[%58, %c0_40, %c0_41], %61 {strides = array<i32>} : memref<1x8x128xf32, #tpu.memory_space<vmem>>, vector<1x8x128xf32>,
    %c1_i32 = arith.constant 1 : i32
    return
  }
  func.func @transform_0(%arg0: i32) -> (i32, i32, i32) {
    %c0_i32 = arith.constant 0 : i32
    %c0_i32_0 = arith.constant 0 : i32
    %c0_i32_1 = arith.constant 0 : i32
    return %arg0, %c0_i32, %c0_i32_0 : i32, i32, i32
  }
  func.func @transform_1(%arg0: i32) -> (i32, i32) {
    %c0_i32 = arith.constant 0 : i32
    %c0_i32_0 = arith.constant 0 : i32
    %c0_i32_1 = arith.constant 0 : i32
    return %c0_i32, %c0_i32_0 : i32, i32
  }
  func.func @transform_2(%arg0: i32) -> (i32, i32) {
    %c0_i32 = arith.constant 0 : i32
    %c0_i32_0 = arith.constant 0 : i32
    %c0_i32_1 = arith.constant 0 : i32
    return %c0_i32, %c0_i32_0 : i32, i32
  }
  func.func @transform_3(%arg0: i32) -> (i32, i32) {
    %c0_i32 = arith.constant 0 : i32
    %c0_i32_0 = arith.constant 0 : i32
    %c0_i32_1 = arith.constant 0 : i32
    return %c0_i32, %c0_i32_0 : i32, i32
  }
  func.func @transform_4(%arg0: i32) -> (i32, i32) {
    %c0_i32 = arith.constant 0 : i32
    %c0_i32_0 = arith.constant 0 : i32
    %c0_i32_1 = arith.constant 0 : i32
    return %c0_i32, %c0_i32_0 : i32, i32
  }
  func.func @transform_5(%arg0: i32) -> (i32, i32) {
    %c0_i32 = arith.constant 0 : i32
    %c0_i32_0 = arith.constant 0 : i32
    %c0_i32_1 = arith.constant 0 : i32
    return %c0_i32, %c0_i32_0 : i32, i32
  }
  func.func @transform_6(%arg0: i32) -> (i32, i32) {
    %c0_i32 = arith.constant 0 : i32
    %c0_i32_0 = arith.constant 0 : i32
    %c0_i32_1 = arith.constant 0 : i32
    return %c0_i32, %c0_i32_0 : i32, i32
  }
  func.func @transform_7(%arg0: i32) -> (i32, i32, i32) {
    %c0_i32 = arith.constant 0 : i32
    %c0_i32_0 = arith.constant 0 : i32
    %c0_i32_1 = arith.constant 0 : i32
    return %arg0, %c0_i32, %c0_i32_0 : i32, i32, i32
  }
}

</mosaic_0001>

<bundles_post_ra>
// kernel: tpu_custom_call.1
= control target key start
LH: loop header
LB: loop body
LE: loop exit
PB: predicated region body
PF: predicated region fallthrough
CT: control target
= control target key end

     0   :  { %12 = vsyncpa [#allocation5], 0  ;;  %s923_s0 = inlined_call_operand.vmem [shape: f32[2,8,128], index: 0, kind: input, shape index: {}]   ;;  %s924_s1 = inlined_call_operand.vmem [shape: f32[8,24], index: 1, kind: input, shape index: {}]   ;;  %s925_s2 = inlined_call_operand.vmem [shape: f32[8,1], index: 2, kind: input, shape index: {}]   ;;  %s926_s3 = inlined_call_operand.hbm [shape: f32[8,24], index: 3, kind: input, shape index: {}]   ;;  %s927_s4 = inlined_call_operand.vmem [shape: f32[8,1], index: 4, kind: input, shape index: {}]   ;;  %s928_s5 = inlined_call_operand.hbm [shape: f32[8,8], index: 5, kind: input, shape index: {}]   ;;  %s929_s6 = inlined_call_operand.vmem [shape: f32[8,1], index: 6, kind: input, shape index: {}]   ;;  %s930_s7 = inlined_call_operand.hbm [shape: f32[2,8,128], index: 7, kind: output, shape index: {}]  }
   0x1   :  { %13 = vsyncpa [#allocation8], 0 }
   0x2   :  { %14 = vsyncpa [#allocation6], 0 }
   0x3   :  { %16 = vsyncpa [#allocation6 + $0x1], 0  ;;  %s795_s24 = smov 0   ;;  %s797_s25 = smov 0  }
   0x4   :  { %s799_s26 = smov 0   ;;  %s801_s27 = smov 0  }
   0x5 LB: > { %s816_s28 = sadd.s32 4294967295, %s748_s27   ;;  %s531_s29 = sadd.s32 4294967294, %s748_s27   ;;  %s748_s27 = sphi %s801_s27, %s937_s27   ;;  %s744_s26 = sphi %s799_s26, %s936_s26   ;;  %s740_s25 = sphi %s797_s25, %s935_s25   ;;  %s736_s24 = sphi %s795_s24, %s934_s24  }
   0x6   : > { %s820_s30 = sadd.s32 1, %s748_s27   ;;  %s181_s8 = sadd.s32 1, %s744_s26 }
   0x7   : > { %s178_s9 = ssub.s32 %s748_s27, %s820_s30  ;;  %p191_p0 = scmp.ne.s32.totalorder %s744_s26, %s740_s25 }
   0x8   : > { %p179_p1 = scmp.eq.s32.totalorder %s178_s9, 0  ;;  %p192_p2 = scmp.eq.s32.totalorder %s816_s28, 1 }
   0x9   : > { %p197_p3 = scmp.ne.s32.totalorder %s740_s25, %s736_s24  ;;  %p198_p4 = scmp.eq.s32.totalorder %s531_s29, 1 }
   0xa   : > { %s831_s10 = scalar_select %p179_p1, %s744_s26, %s181_s8  }
   0xb   : > { %p833_p5 = por %p192_p2, %p191_p0  ;;  %p837_p6 = por %p198_p4, %p197_p3 }
   0xc   : > { %p532_p7 = scmp.ge.s32.totalorder %s748_s27, 1  ;;  %p205_p8 = scmp.lt.s32.totalorder %s748_s27, 3 }
   0xd   : > { %p573_p9 = scmp.eq.s32.totalorder %s816_s28, 0  ;;  %s223_s16 = sshll.u32 %s926_s3, 4  ;;  %s224_s16 = int_to_ptr.hbm [resolvable:$true] %s223_s16 }
   0xe   : > { %p844_p10 = pnand %p532_p7, %p205_p8  ;;  %s750_s17 = smov [#allocation4]  }
   0xf   : > { %s225_s18 = sshll.u32 %s750_s17, 4  ;;  %s238_s21 = sshll.u32 %s928_s5, 4  ;;  %s226_s18 = int_to_ptr.vmem [resolvable:$true] %s225_s18  ;;  %s239_s21 = int_to_ptr.hbm [resolvable:$true] %s238_s21 }
  0x10   : > { %p562_p11 = pneg %p844_p10  ;;  %s751_s22 = smov [#allocation7]  }
  0x11   : > { %s240_s23 = sshll.u32 %s751_s22, 4  ;;  %263 = sbr.rel (%p844_p10) target bundleno = 541 (0x21d), region = 48  ;;  %s241_s23 = int_to_ptr.vmem [resolvable:$true] %s240_s23 }
  0x12   : > { %p563_p12 = pnand %p573_p9, %p562_p11 }
  0x14   : > { %565 = dma.hbm_to_vmem [thread:$0]  (!%p563_p12), %s224_s16, 128, %s226_s18, [#allocation5]  }
  0x15   : > { %568 = dma.hbm_to_vmem [thread:$0]  (!%p563_p12), %s239_s21, 128, %s241_s23, [#allocation8]  }
  0x16   : > { %723 = dma.done.wait (%p573_p9), [#allocation5], 128  }
  0x17   : > { %725 = vsyncadd (%p573_p9), [#allocation5], 4294967168 }
  0x18   : > { %727 = dma.done.wait (%p573_p9), [#allocation8], 128  }
  0x19   : > { %729 = vsyncadd (%p573_p9), [#allocation8], 4294967168  ;;  %p300_p13 = scmp.lt.s32.totalorder %s816_s28, 1  ;;  %s752_s15 = smov 2   ;;  %v326_v1 = vld [vmem:[%s925_s2] sm:$0xff]  ;;  %v754_v2 = vmov 0   ;;  %v304_v3 = vlaneseq }
  0x1a   : > { %s753_s16 = smov 4   ;;  %615 = vset.pattern.permute.xlu1 %v754_v2  ;;  %617 = vset.pattern.permute.xlu0 %v754_v2  ;;  %v322_v6 = vld [vmem:[%s924_s1] sm:$0xff]  ;;  %vm332_vm2 = vcmask 195584   ;;  %v400_v12 = vld [vmem:[#allocation7] sm:$0xff]  ;;  %vm407_vm3 = vcmask 64512   ;;  %s545_s13 = sshll.u32 %s816_s28, 3 }
  0x1b   : > { %s301_s29 = scalar_select %p300_p13, %s816_s28, 1  ;;  %329 = vperm.xlu1 %615, %v326_v1   ;;  %616 = vset.pattern.permute.xlu2 %v754_v2  ;;  %v305_v4 = vand.u32 127, %v304_v3  ;;  %v401_v13 = vld [vmem:[%s929_s6] sm:$0xff] }
  0x1c   : > { %v370_v14 = vld [vmem:[%s927_s4] sm:$0xff] }
  0x1d   : > { %s540_s8 = sshll.u32 %s301_s29, 3  ;;  %vm307_vm0 = vcmp.ge.s32.totalorder %v305_v4, 2  ;;  %vm306_vm1 = vcmp.ge.s32.totalorder %v305_v4, 4  ;;  %v366_v16 = vld [vmem:[#allocation4] sm:$0xff]  ;;  %s698_s29 = scalar_lea.hbm %s930_s7, 16 }
  0x1e   : > { %s303_s14 = scalar_lea.vmem %s923_s0, %s540_s8  ;;  %s297_s8 = sand.u32 1, %s740_s25  }
  0x1f   : > { %v308_v0 = vld [vmem:[%s303_s14] sm:$0xff]  ;;  %s539_s9 = sshll.u32 %s297_s8, 3  ;;  %s435_s20 = scalar_lea.sflag [#allocation6], %s297_s8 }
  0x20   : > { %315 = vrot.lane.b32.xlu0 %v308_v0, %s752_s15  ;;  %349 = vmatpush.msra.mxu0 %v308_v0  ;;  %s299_s17 = scalar_lea.vmem [#allocation9], %s539_s9 }
  0x21   : > { %426 = vmatpush.msra.mxu2 %v308_v0  ;;  %s447_s18 = sshll.u32 %s299_s17, 4  ;;  %s448_s18 = int_to_ptr.vmem [resolvable:$true] %s447_s18 }
  0x22   : > { %543 = vmatmul.msk.f32.vlgmr.msra.gmra.mxu2 %vm407_vm3, %v400_v12 }
  0x28   : > { %309 = vrot.lane.b32.xlu0 %v308_v0, %s753_s16 }
  0x30   : > { %404 = vperm.xlu0 %617, %v401_v13  }
  0x8d   : > { %v330_v8 = vpop.permute.xlu1 %329 }
  0x92   : > { %v316_v5 = vpop.permute.xlu0 %315 }
  0x93   : > { %548 = vmatpush.msk.msra.mxu0 %vm307_vm0, %v316_v5 }
  0x9a   : > { %v310_v7 = vpop.permute.xlu0 %309 }
  0x9b   : > { %549 = vmatpush.msk.msra.mxu0 %vm306_vm1, %v310_v7 }
  0x9c   : > { %541 = vmatmul.msk.f32.vlgmr.msra.gmra.mxu0 %vm332_vm2, %v322_v6 }
  0xa2   : > { %v405_v19 = vpop.permute.xlu0 %404 }
  0xa5   : > { %v428_v20 = vpop.f32.mrf.mxu2 }
  0xa6   : > { %v429_v23 = vadd.f32 %v428_v20, %v405_v19 }
 0x119   : > { %v353_v9 = vpop.f32.mrf.mxu0 }
 0x11a   : > { %v354_v10 = vadd.f32 %v353_v9, %v330_v8 }
 0x11c   : > { %v356_v11 = vmax.f32 %v354_v10, 0.0 }
 0x11e   : > { %357 = vrot.lane.b32.xlu2 %v356_v11, %s753_s16  ;;  %361 = vrot.lane.b32.xlu1 %v356_v11, %s752_s15  ;;  %s445_s16 = scalar_lea.hbm %s930_s7, %s545_s13 }
 0x11f   : > { %392 = vmatpush.msra.mxu1 %v356_v11  ;;  %s449_s19 = sshll.u32 %s445_s16, 4  ;;  %s450_s19 = int_to_ptr.hbm [resolvable:$true] %s449_s19 }
 0x120   : > { %s692_s21 = sshra.s32 %s450_s19, 4  ;;  %s693_s21 = int_to_ptr.hbm [resolvable:$true] %s692_s21 }
 0x121   : > { %s694_s28 = scalar_lea.hbm %s693_s21, 8  ;;  %p699_p3 = scmp.lt.s32.totalorder %s693_s21, %s930_s7 }
 0x122   : > { %p695_p0 = scmp.ne.s32.totalorder %s693_s21, %s694_s28  ;;  %p700_p4 = scmp.lt.s32.totalorder %s698_s29, %s694_s28 }
 0x124   : > { %p696_p1 = pnand %p695_p0, %p833_p5  ;;  %p701_p7 = por %p700_p4, %p699_p3 }
 0x126   : > { %373 = vperm.xlu2 %616, %v370_v14   ;;  %p697_p2 = pneg %p696_p1 }
 0x128   : > { %p702_p8 = pnand %p701_p7, %p697_p2 }
 0x178   : > { %v358_v17 = vpop.permute.xlu2 %357 }
 0x180   : > { %v374_v18 = vpop.permute.xlu2 %373 }
 0x190   : > { %v362_v15 = vpop.permute.xlu1 %361 }
 0x191   : > { %550 = vmatpush.msk.msra.mxu1 %vm307_vm0, %v362_v15 }
 0x193   : > { %551 = vmatpush.msk.msra.mxu1 %vm306_vm1, %v358_v17 }
 0x194   : > { %542 = vmatmul.msk.f32.vlgmr.msra.gmra.mxu1 %vm332_vm2, %v366_v16 }
 0x211   : > { %v396_v21 = vpop.f32.mrf.mxu1 }
 0x212   : > { %v397_v22 = vadd.f32 %v396_v21, %v374_v18 }
 0x214   : > { %v399_v24 = vmax.f32 %v397_v22, 0.0 }
 0x216   : > { %v431_v25 = vadd.f32 %v429_v23, %v399_v24 }
 0x218   : > { %v432_v26 = vmax.f32 %v431_v25, 0.0 }
 0x21a   : > { %433 = vst [vmem:[%s299_s17] sm:$0xff] %v432_v26 }
 0x21b   : > { %705 = shalt.err (!%p702_p8)
}
 0x21c   : > { %560 = dma.vmem_to_hbm [thread:$0]  (%p833_p5), %s448_s18, 128, %s450_s19, %s435_s20  }
 0x21d PF: > { %p577_p9 = scmp.ge.s32.totalorder %s748_s27, 2  ;;  %s461_s8 = sand.u32 1, %s736_s24  }
 0x21e   : > { %s462_s14 = scalar_lea.sflag [#allocation6], %s461_s8 }
 0x21f   : > { %p570_p10 = pnand %p577_p9, %p837_p6 }
 0x221   : > { %p571_p11 = pneg %p570_p10 }
 0x223   : > { %731 = dma.done.wait (%p571_p11), %s462_s14, 128  }
 0x224   : > { %733 = vsyncadd (%p571_p11), %s462_s14, 4294967168  ;;  %p19_p12 = scmp.ge.s32.totalorder %s820_s30, 4   ;;  %s934_s24 = smov %s740_s25 }
 0x225   : > { %s935_s25 = smov %s744_s26  ;;  %s936_s26 = smov %s831_s10 }
 0x226   : > { %s937_s27 = smov %s820_s30  ;;  %21 = sbr.rel (!%p19_p12) target bundleno = 5 (0x5), region = 92 }
 0x22b   :  { %468 = vsyncpa [#allocation5], 1 }
 0x22c   :  { %470 = vsyncpa [#allocation5 + $0x1], 1 }
 0x22d   :  { %471 = vsyncpa [#allocation8], 1 }
 0x22e   :  { %472 = vsyncpa [#allocation6], 1 }
 0x22f   :  { %474 = vsyncpa [#allocation6 + $0x1], 1 }

// kernel: tpu_custom_call.1
= control target key start
LH: loop header
LB: loop body
LE: loop exit
PB: predicated region body
PF: predicated region fallthrough
CT: control target
= control target key end

     0   :  { %12 = vsyncpa [#allocation5], 0  ;;  %s923_s0 = inlined_call_operand.vmem [shape: f32[2,8,128], index: 0, kind: input, shape index: {}]   ;;  %s924_s1 = inlined_call_operand.vmem [shape: f32[8,24], index: 1, kind: input, shape index: {}]   ;;  %s925_s2 = inlined_call_operand.vmem [shape: f32[8,1], index: 2, kind: input, shape index: {}]   ;;  %s926_s3 = inlined_call_operand.hbm [shape: f32[8,24], index: 3, kind: input, shape index: {}]   ;;  %s927_s4 = inlined_call_operand.vmem [shape: f32[8,1], index: 4, kind: input, shape index: {}]   ;;  %s928_s5 = inlined_call_operand.hbm [shape: f32[8,8], index: 5, kind: input, shape index: {}]   ;;  %s929_s6 = inlined_call_operand.vmem [shape: f32[8,1], index: 6, kind: input, shape index: {}]   ;;  %s930_s7 = inlined_call_operand.hbm [shape: f32[2,8,128], index: 7, kind: output, shape index: {}]  }
   0x1   :  { %13 = vsyncpa [#allocation8], 0 }
   0x2   :  { %14 = vsyncpa [#allocation6], 0 }
   0x3   :  { %16 = vsyncpa [#allocation6 + $0x1], 0  ;;  %s795_s24 = smov 0   ;;  %s797_s25 = smov 0  }
   0x4   :  { %s799_s26 = smov 0   ;;  %s801_s27 = smov 0  }
   0x5 LB: > { %s816_s28 = sadd.s32 4294967295, %s748_s27   ;;  %s531_s29 = sadd.s32 4294967294, %s748_s27   ;;  %s748_s27 = sphi %s801_s27, %s937_s27   ;;  %s744_s26 = sphi %s799_s26, %s936_s26   ;;  %s740_s25 = sphi %s797_s25, %s935_s25   ;;  %s736_s24 = sphi %s795_s24, %s934_s24  }
   0x6   : > { %s820_s30 = sadd.s32 1, %s748_s27   ;;  %s181_s8 = sadd.s32 1, %s744_s26 }
   0x7   : > { %s178_s9 = ssub.s32 %s748_s27, %s820_s30  ;;  %p191_p0 = scmp.ne.s32.totalorder %s744_s26, %s740_s25 }
   0x8   : > { %p179_p1 = scmp.eq.s32.totalorder %s178_s9, 0  ;;  %p192_p2 = scmp.eq.s32.totalorder %s816_s28, 1 }
   0x9   : > { %p197_p3 = scmp.ne.s32.totalorder %s740_s25, %s736_s24  ;;  %p198_p4 = scmp.eq.s32.totalorder %s531_s29, 1 }
   0xa   : > { %s831_s10 = scalar_select %p179_p1, %s744_s26, %s181_s8  }
   0xb   : > { %p833_p5 = por %p192_p2, %p191_p0  ;;  %p837_p6 = por %p198_p4, %p197_p3 }
   0xc   : > { %p532_p7 = scmp.ge.s32.totalorder %s748_s27, 1  ;;  %p205_p8 = scmp.lt.s32.totalorder %s748_s27, 3 }
   0xd   : > { %p573_p9 = scmp.eq.s32.totalorder %s816_s28, 0  ;;  %s223_s16 = sshll.u32 %s926_s3, 4  ;;  %s224_s16 = int_to_ptr.hbm [resolvable:$true] %s223_s16 }
   0xe   : > { %p844_p10 = pnand %p532_p7, %p205_p8  ;;  %s750_s17 = smov [#allocation4]  }
   0xf   : > { %s225_s18 = sshll.u32 %s750_s17, 4  ;;  %s238_s21 = sshll.u32 %s928_s5, 4  ;;  %s226_s18 = int_to_ptr.vmem [resolvable:$true] %s225_s18  ;;  %s239_s21 = int_to_ptr.hbm [resolvable:$true] %s238_s21 }
  0x10   : > { %p562_p11 = pneg %p844_p10  ;;  %s751_s22 = smov [#allocation7]  }
  0x11   : > { %s240_s23 = sshll.u32 %s751_s22, 4  ;;  %263 = sbr.rel (%p844_p10) target bundleno = 541 (0x21d), region = 48  ;;  %s241_s23 = int_to_ptr.vmem [resolvable:$true] %s240_s23 }
  0x12   : > { %p563_p12 = pnand %p573_p9, %p562_p11 }
  0x14   : > { %565 = dma.hbm_to_vmem [thread:$0]  (!%p563_p12), %s224_s16, 128, %s226_s18, [#allocation5]  }
  0x15   : > { %568 = dma.hbm_to_vmem [thread:$0]  (!%p563_p12), %s239_s21, 128, %s241_s23, [#allocation8]  }
  0x16   : > { %723 = dma.done.wait (%p573_p9), [#allocation5], 128  }
  0x17   : > { %725 = vsyncadd (%p573_p9), [#allocation5], 4294967168 }
  0x18   : > { %727 = dma.done.wait (%p573_p9), [#allocation8], 128  }
  0x19   : > { %729 = vsyncadd (%p573_p9), [#allocation8], 4294967168  ;;  %p300_p13 = scmp.lt.s32.totalorder %s816_s28, 1  ;;  %s752_s15 = smov 2   ;;  %v326_v1 = vld [vmem:[%s925_s2] sm:$0xff]  ;;  %v754_v2 = vmov 0   ;;  %v304_v3 = vlaneseq }
  0x1a   : > { %s753_s16 = smov 4   ;;  %615 = vset.pattern.permute.xlu1 %v754_v2  ;;  %617 = vset.pattern.permute.xlu0 %v754_v2  ;;  %v322_v6 = vld [vmem:[%s924_s1] sm:$0xff]  ;;  %vm332_vm2 = vcmask 195584   ;;  %v400_v12 = vld [vmem:[#allocation7] sm:$0xff]  ;;  %vm407_vm3 = vcmask 64512   ;;  %s545_s13 = sshll.u32 %s816_s28, 3 }
  0x1b   : > { %s301_s29 = scalar_select %p300_p13, %s816_s28, 1  ;;  %329 = vperm.xlu1 %615, %v326_v1   ;;  %616 = vset.pattern.permute.xlu2 %v754_v2  ;;  %v305_v4 = vand.u32 127, %v304_v3  ;;  %v401_v13 = vld [vmem:[%s929_s6] sm:$0xff] }
  0x1c   : > { %v370_v14 = vld [vmem:[%s927_s4] sm:$0xff] }
  0x1d   : > { %s540_s8 = sshll.u32 %s301_s29, 3  ;;  %vm307_vm0 = vcmp.ge.s32.totalorder %v305_v4, 2  ;;  %vm306_vm1 = vcmp.ge.s32.totalorder %v305_v4, 4  ;;  %v366_v16 = vld [vmem:[#allocation4] sm:$0xff]  ;;  %s698_s29 = scalar_lea.hbm %s930_s7, 16 }
  0x1e   : > { %s303_s14 = scalar_lea.vmem %s923_s0, %s540_s8  ;;  %s297_s8 = sand.u32 1, %s740_s25  }
  0x1f   : > { %v308_v0 = vld [vmem:[%s303_s14] sm:$0xff]  ;;  %s539_s9 = sshll.u32 %s297_s8, 3  ;;  %s435_s20 = scalar_lea.sflag [#allocation6], %s297_s8 }
  0x20   : > { %315 = vrot.lane.b32.xlu0 %v308_v0, %s752_s15  ;;  %349 = vmatpush.msra.mxu0 %v308_v0  ;;  %s299_s17 = scalar_lea.vmem [#allocation9], %s539_s9 }
  0x21   : > { %426 = vmatpush.msra.mxu2 %v308_v0  ;;  %s447_s18 = sshll.u32 %s299_s17, 4  ;;  %s448_s18 = int_to_ptr.vmem [resolvable:$true] %s447_s18 }
  0x22   : > { %543 = vmatmul.msk.f32.vlgmr.msra.gmra.mxu2 %vm407_vm3, %v400_v12 }
  0x28   : > { %309 = vrot.lane.b32.xlu0 %v308_v0, %s753_s16 }
  0x30   : > { %404 = vperm.xlu0 %617, %v401_v13  }
  0x8d   : > { %v330_v8 = vpop.permute.xlu1 %329 }
  0x92   : > { %v316_v5 = vpop.permute.xlu0 %315 }
  0x93   : > { %548 = vmatpush.msk.msra.mxu0 %vm307_vm0, %v316_v5 }
  0x9a   : > { %v310_v7 = vpop.permute.xlu0 %309 }
  0x9b   : > { %549 = vmatpush.msk.msra.mxu0 %vm306_vm1, %v310_v7 }
  0x9c   : > { %541 = vmatmul.msk.f32.vlgmr.msra.gmra.mxu0 %vm332_vm2, %v322_v6 }
  0xa2   : > { %v405_v19 = vpop.permute.xlu0 %404 }
  0xa5   : > { %v428_v20 = vpop.f32.mrf.mxu2 }
  0xa6   : > { %v429_v23 = vadd.f32 %v428_v20, %v405_v19 }
 0x119   : > { %v353_v9 = vpop.f32.mrf.mxu0 }
 0x11a   : > { %v354_v10 = vadd.f32 %v353_v9, %v330_v8 }
 0x11c   : > { %v356_v11 = vmax.f32 %v354_v10, 0.0 }
 0x11e   : > { %357 = vrot.lane.b32.xlu2 %v356_v11, %s753_s16  ;;  %361 = vrot.lane.b32.xlu1 %v356_v11, %s752_s15  ;;  %s445_s16 = scalar_lea.hbm %s930_s7, %s545_s13 }
 0x11f   : > { %392 = vmatpush.msra.mxu1 %v356_v11  ;;  %s449_s19 = sshll.u32 %s445_s16, 4  ;;  %s450_s19 = int_to_ptr.hbm [resolvable:$true] %s449_s19 }
 0x120   : > { %s692_s21 = sshra.s32 %s450_s19, 4  ;;  %s693_s21 = int_to_ptr.hbm [resolvable:$true] %s692_s21 }
 0x121   : > { %s694_s28 = scalar_lea.hbm %s693_s21, 8  ;;  %p699_p3 = scmp.lt.s32.totalorder %s693_s21, %s930_s7 }
 0x122   : > { %p695_p0 = scmp.ne.s32.totalorder %s693_s21, %s694_s28  ;;  %p700_p4 = scmp.lt.s32.totalorder %s698_s29, %s694_s28 }
 0x124   : > { %p696_p1 = pnand %p695_p0, %p833_p5  ;;  %p701_p7 = por %p700_p4, %p699_p3 }
 0x126   : > { %373 = vperm.xlu2 %616, %v370_v14   ;;  %p697_p2 = pneg %p696_p1 }
 0x128   : > { %p702_p8 = pnand %p701_p7, %p697_p2 }
 0x178   : > { %v358_v17 = vpop.permute.xlu2 %357 }
 0x180   : > { %v374_v18 = vpop.permute.xlu2 %373 }
 0x190   : > { %v362_v15 = vpop.permute.xlu1 %361 }
 0x191   : > { %550 = vmatpush.msk.msra.mxu1 %vm307_vm0, %v362_v15 }
 0x193   : > { %551 = vmatpush.msk.msra.mxu1 %vm306_vm1, %v358_v17 }
 0x194   : > { %542 = vmatmul.msk.f32.vlgmr.msra.gmra.mxu1 %vm332_vm2, %v366_v16 }
 0x211   : > { %v396_v21 = vpop.f32.mrf.mxu1 }
 0x212   : > { %v397_v22 = vadd.f32 %v396_v21, %v374_v18 }
 0x214   : > { %v399_v24 = vmax.f32 %v397_v22, 0.0 }
 0x216   : > { %v431_v25 = vadd.f32 %v429_v23, %v399_v24 }
 0x218   : > { %v432_v26 = vmax.f32 %v431_v25, 0.0 }
 0x21a   : > { %433 = vst [vmem:[%s299_s17] sm:$0xff] %v432_v26 }
 0x21b   : > { %705 = shalt.err (!%p702_p8)
}
 0x21c   : > { %560 = dma.vmem_to_hbm [thread:$0]  (%p833_p5), %s448_s18, 128, %s450_s19, %s435_s20  }
 0x21d PF: > { %p577_p9 = scmp.ge.s32.totalorder %s748_s27, 2  ;;  %s461_s8 = sand.u32 1, %s736_s24  }
 0x21e   : > { %s462_s14 = scalar_lea.sflag [#allocation6], %s461_s8 }
 0x21f   : > { %p570_p10 = pnand %p577_p9, %p837_p6 }
 0x221   : > { %p571_p11 = pneg %p570_p10 }
 0x223   : > { %731 = dma.done.wait (%p571_p11), %s462_s14, 128  }
 0x224   : > { %733 = vsyncadd (%p571_p11), %s462_s14, 4294967168  ;;  %p19_p12 = scmp.ge.s32.totalorder %s820_s30, 4   ;;  %s934_s24 = smov %s740_s25 }
 0x225   : > { %s935_s25 = smov %s744_s26  ;;  %s936_s26 = smov %s831_s10 }
 0x226   : > { %s937_s27 = smov %s820_s30  ;;  %21 = sbr.rel (!%p19_p12) target bundleno = 5 (0x5), region = 92 }
 0x22b   :  { %468 = vsyncpa [#allocation5], 1 }
 0x22c   :  { %470 = vsyncpa [#allocation5 + $0x1], 1 }
 0x22d   :  { %471 = vsyncpa [#allocation8], 1 }
 0x22e   :  { %472 = vsyncpa [#allocation6], 1 }
 0x22f   :  { %474 = vsyncpa [#allocation6 + $0x1], 1 }

</bundles_post_ra>
